<compile_context>
chip_gen: v5e
topology: v5e:2x2
jax: 0.10.0
libtpu: 0.0.40
codegen_flags: <defaults>
</compile_context>

<pallas_src>
import functools

import jax
import jax.numpy as jnp
from jax.experimental import pallas as pl
from jax.experimental.pallas import tpu as pltpu

LANE = 128      # feature-dim alignment (vreg lane width)
SUBLANE = 8     # batch-dim alignment (vreg sublane width)
# TODO(synk): on v6e/v7x (256x256 MXU) prefer 256-multiples for the padded dims.


def _round_up(x: int, m: int) -> int:
    return ((x + m - 1) // m) * m


def _cdiv(a: int, b: int) -> int:
    return -(-a // b)


def _mlp_kernel(x_ref, w_in_ref, b_in_ref, w_hid_ref, b_hid_ref,
                w_out_ref, b_out_ref, o_ref, *, n_hidden: int):
    """Fused MLP on one batch tile.  Weights bf16, accumulation f32.

    x_ref:     (TILE_B, IN_PAD)    f32 activation tile (streams along grid)
    w_in_ref:  (IN_PAD, H_PAD)     bf16, VMEM-resident (single-buffered)
    b_in_ref:  (1, H_PAD)          f32
    w_hid_ref: (Lh, H_PAD, H_PAD)  bf16 stacked hidden weights (dummy if n_hidden==0)
    b_hid_ref: (Lh, 1, H_PAD)      f32
    w_out_ref: (H_PAD, OUT_PAD)    bf16
    b_out_ref: (1, OUT_PAD)        f32
    o_ref:     (TILE_B, OUT_PAD)   f32 output tile (lane-dense, unmasked stores)
    """
    # Input layer + ReLU: bf16 MXU inputs, f32 accumulate, f32 VPU bias/ReLU.
    h = jnp.dot(x_ref[...].astype(jnp.bfloat16), w_in_ref[...],
                preferred_element_type=jnp.float32)
    h = jnp.maximum(h + b_in_ref[...], 0.0)
    # Hidden layers: static Python loop -> fully unrolled in the kernel body.
    for layer in range(n_hidden):
        h = jnp.dot(h.astype(jnp.bfloat16), w_hid_ref[layer],
                    preferred_element_type=jnp.float32)
        h = jnp.maximum(h + b_hid_ref[layer], 0.0)
    # Output layer: no activation.
    h = jnp.dot(h.astype(jnp.bfloat16), w_out_ref[...],
                preferred_element_type=jnp.float32)
    o_ref[...] = (h + b_out_ref[...]).astype(o_ref.dtype)


def mlp_fused_pallas(x_pad, w_in, b_in, w_hid, b_hid, w_out, b_out,
                     *, tile_b: int, n_hidden: int):
    """Run the whole padded MLP in one pallas_call, tiled over the batch axis only."""
    B_pad, in_pad = x_pad.shape
    h_pad = w_in.shape[1]
    out_pad = w_out.shape[1]
    l_stack = w_hid.shape[0]
    assert B_pad % tile_b == 0
    n_tiles = B_pad // tile_b

    kernel = functools.partial(_mlp_kernel, n_hidden=n_hidden)

    # VMEM budget: bf16 weights (single-buffered) + f32 biases + double-buffered
    # activation tiles + headroom for unrolled f32 intermediates.
    weight_bytes = (w_in.size + w_hid.size + w_out.size) * w_in.dtype.itemsize
    bias_bytes = (b_in.size + b_hid.size + b_out.size) * 4
    act_bytes = 4 * tile_b * (2 * in_pad + 2 * out_pad + 4 * h_pad)
    vmem_limit = int(min(64 << 20,
                         max(32 << 20, 1.5 * (weight_bytes + bias_bytes + act_bytes))))

    flops = 2 * B_pad * (in_pad * h_pad + n_hidden * h_pad * h_pad + h_pad * out_pad)
    bytes_accessed = int(x_pad.size * x_pad.dtype.itemsize
                         + weight_bytes + bias_bytes
                         + B_pad * out_pad * 4)

    def build(single_buffer_weights: bool):
        # Constant-index_map blocks never get re-fetched; a single buffer halves
        # their VMEM footprint (the dominant consumer).
        wkw = dict(pipeline_mode=pl.Buffered(1)) if single_buffer_weights else {}
        return pl.pallas_call(
            kernel,
            out_shape=jax.ShapeDtypeStruct((B_pad, out_pad), x_pad.dtype),
            grid=(n_tiles,),
            in_specs=[
                # activation tile streams along the batch grid axis (double-buffered)
                pl.BlockSpec((tile_b, in_pad), lambda i: (i, 0)),
                # weights / biases: same block every grid step -> loaded once, VMEM-resident
                pl.BlockSpec((in_pad, h_pad), lambda i: (0, 0), **wkw),
                pl.BlockSpec((1, h_pad), lambda i: (0, 0), **wkw),
                pl.BlockSpec((l_stack, h_pad, h_pad), lambda i: (0, 0, 0), **wkw),
                pl.BlockSpec((l_stack, 1, h_pad), lambda i: (0, 0, 0), **wkw),
                pl.BlockSpec((h_pad, out_pad), lambda i: (0, 0), **wkw),
                pl.BlockSpec((1, out_pad), lambda i: (0, 0), **wkw),
            ],
            out_specs=pl.BlockSpec((tile_b, out_pad), lambda i: (i, 0)),
            compiler_params=pltpu.CompilerParams(
                # batch tiles are independent -> megacore sharding on v7x, harmless elsewhere
                dimension_semantics=("parallel",),
                vmem_limit_bytes=vmem_limit,
            ),
            cost_estimate=pl.CostEstimate(
                flops=flops, transcendentals=0, bytes_accessed=bytes_accessed),
        )

    args = (x_pad, w_in, b_in, w_hid, b_hid, w_out, b_out)
    try:
        return build(True)(*args)
    except Exception:
        # Graceful degradation: default double-buffering for the constant weight blocks.
        return build(False)(*args)


class FeedForwardNNPallas:
    """JAX/Pallas equivalent of the PyTorch FeedForwardNN forward pass (relu activation)."""

    MAX_TILE_B = 512
    ACT_VMEM_BUDGET = 12 << 20   # soft cap for activation-tile VMEM (v7x-safe)

    def __init__(self, input_dim, output_dim, hidden_dim, hidden_depth, key):
        self.input_dim = input_dim
        self.output_dim = output_dim
        self.hidden_dim = hidden_dim
        self.hidden_depth = hidden_depth
        self.n_hidden = hidden_depth - 1   # number of h->h hidden layers

        # Layer dims exactly as the PyTorch module:
        #   input_layer (in->h), (hidden_depth-1) hidden layers (h->h), output_layer (h->out)
        dims = [input_dim] + [hidden_dim] * hidden_depth + [output_dim]
        self.weights, self.biases = [], []
        for i in range(len(dims) - 1):
            key, sub = jax.random.split(key)
            fan_in, fan_out = dims[i], dims[i + 1]
            # deterministic scaled-normal init (synthetic stand-in for init_func)
            w = jax.random.normal(sub, (fan_in, fan_out), jnp.float32) / jnp.sqrt(
                jnp.float32(fan_in))
            b = jnp.zeros((fan_out,), jnp.float32)  # nn.init.zeros_(bias)
            self.weights.append(w)
            self.biases.append(b)

        # --- Pre-pack per-boundary padded parameters for the fused kernel ---
        # Zero padding is mathematically inert: padded input columns hit zero weight
        # rows, padded output columns get zero weights + zero bias (ReLU(0)=0).
        self.in_pad = _round_up(input_dim, LANE)
        self.h_pad = _round_up(hidden_dim, LANE)
        self.out_pad = _round_up(output_dim, LANE)

        # first layer (bf16 weights, f32 bias)
        self.w_in = (jnp.zeros((self.in_pad, self.h_pad), jnp.float32)
                     .at[:input_dim, :hidden_dim].set(self.weights[0])
                     ).astype(jnp.bfloat16)
        self.b_in = (jnp.zeros((1, self.h_pad), jnp.float32)
                     .at[0, :hidden_dim].set(self.biases[0]))
        # hidden stack
        if self.n_hidden > 0:
            w_h, b_h = [], []
            for l in range(1, 1 + self.n_hidden):
                w_h.append(jnp.zeros((self.h_pad, self.h_pad), jnp.float32)
                           .at[:hidden_dim, :hidden_dim].set(self.weights[l]))
                b_h.append(jnp.zeros((1, self.h_pad), jnp.float32)
                           .at[0, :hidden_dim].set(self.biases[l]))
            self.w_hid = jnp.stack(w_h).astype(jnp.bfloat16)   # (Lh, h_pad, h_pad)
            self.b_hid = jnp.stack(b_h)                        # (Lh, 1, h_pad)
        else:
            # dummy block: the kernel's static hidden loop has zero iterations
            self.w_hid = jnp.zeros((1, self.h_pad, self.h_pad), jnp.bfloat16)
            self.b_hid = jnp.zeros((1, 1, self.h_pad), jnp.float32)
        # output layer
        self.w_out = (jnp.zeros((self.h_pad, self.out_pad), jnp.float32)
                      .at[:hidden_dim, :output_dim].set(self.weights[-1])
                      ).astype(jnp.bfloat16)
        self.b_out = (jnp.zeros((1, self.out_pad), jnp.float32)
                      .at[0, :output_dim].set(self.biases[-1]))

        # TODO(synk): for hidden widths where the bf16 stack no longer fits scoped VMEM
        # (~2-3k hidden on v7x's 64 MiB), keep the hidden stack in HBM
        # (memory_space=pl.ANY) and stream per-layer weight tiles with
        # pltpu.emit_pipeline / make_async_copy instead of requiring residency.

    def _select_batch_tiling(self, B):
        # Cap tile_b so double-buffered in/out tiles + f32 intermediates stay under budget.
        act_bytes_per_row = 4 * (2 * self.in_pad + 2 * self.out_pad + 4 * self.h_pad)
        budget_tile = max(SUBLANE,
                          (self.ACT_VMEM_BUDGET // act_bytes_per_row) // SUBLANE * SUBLANE)
        max_tile_b = min(self.MAX_TILE_B, budget_tile)
        n_tiles = _cdiv(B, max_tile_b)
        # v7x has 2 TensorCores: give the "parallel" batch axis >= 2 steps when the
        # batch is large enough to be compute-bound (no-op on v5e/v6e).
        if n_tiles == 1 and B >= 256:
            n_tiles = 2
        # Balance tiles to minimize tail padding (avoid round_up(B, fixed_tile) blowup).
        tile_b = _round_up(_cdiv(B, n_tiles), SUBLANE)
        return tile_b, n_tiles * tile_b

    def __call__(self, x):
        B, F_in = x.shape
        assert F_in == self.input_dim
        tile_b, b_pad = self._select_batch_tiling(B)

        x_pad = jnp.zeros((b_pad, self.in_pad), jnp.float32).at[:B, :F_in].set(x)
        out_pad = mlp_fused_pallas(
            x_pad, self.w_in, self.b_in, self.w_hid, self.b_hid,
            self.w_out, self.b_out, tile_b=tile_b, n_hidden=self.n_hidden)
        return out_pad[:B, :self.output_dim]


if __name__ == "__main__":
    key = jax.random.PRNGKey(0)
    key, k_in = jax.random.split(key)

    batch = 8
    input_dim = 16
    hidden_dim = 32
    output_dim = 8
    hidden_depth = 3  # -> 4 linear layers: in->h, h->h, h->h, h->out (matches PyTorch module)

    model = FeedForwardNNPallas(input_dim, output_dim, hidden_dim, hidden_depth, key)
    x = jax.random.normal(k_in, (batch, input_dim), jnp.float32)

    out = jax.block_until_ready(model(x))

    # Reference: same math in plain JAX with matching bf16-input / f32-accumulate matmuls.
    ref = x
    for li in range(len(model.weights) - 1):
        ref = jnp.maximum(
            jnp.dot(ref.astype(jnp.bfloat16),
                    model.weights[li].astype(jnp.bfloat16),
                    preferred_element_type=jnp.float32) + model.biases[li], 0.0)
    ref = jnp.dot(ref.astype(jnp.bfloat16),
                  model.weights[-1].astype(jnp.bfloat16),
                  preferred_element_type=jnp.float32) + model.biases[-1]

    assert out.shape == (batch, output_dim)
    err = float(jnp.max(jnp.abs(out - ref)))
    assert jnp.allclose(out, ref, atol=5e-2, rtol=5e-2), err

    print("KERNEL_OK")
</pallas_src>

<mosaic_0001>
module attributes {stable_mosaic.version = 11 : i64} {
  func.func @_mlp_kernel(%arg0: i32, %arg1: memref<8x128xf32, #tpu.memory_space<vmem>>, %arg2: memref<128x128xbf16, #tpu.memory_space<vmem>>, %arg3: memref<1x128xf32, #tpu.memory_space<vmem>>, %arg4: memref<2x128x128xbf16, #tpu.memory_space<vmem>>, %arg5: memref<2x1x128xf32, #tpu.memory_space<vmem>>, %arg6: memref<128x128xbf16, #tpu.memory_space<vmem>>, %arg7: memref<1x128xf32, #tpu.memory_space<vmem>>, %arg8: memref<8x128xf32, #tpu.memory_space<vmem>>) attributes {dimension_semantics = [#tpu.dimension_semantics<parallel>], iteration_bounds = array<i64: 1>, scalar_prefetch = 0 : i64, scratch_operands = 0 : i64, tpu.core_type = #tpu.core_type<tc>, window_params = [{transform_indices = @transform_0, window_bounds = array<i64: 8, 128>}, {pipeline_mode = #tpu.pipeline_mode<synchronous>, transform_indices = @transform_1, window_bounds = array<i64: 128, 128>}, {pipeline_mode = #tpu.pipeline_mode<synchronous>, transform_indices = @transform_2, window_bounds = array<i64: 1, 128>}, {pipeline_mode = #tpu.pipeline_mode<synchronous>, transform_indices = @transform_3, window_bounds = array<i64: 2, 128, 128>}, {pipeline_mode = #tpu.pipeline_mode<synchronous>, transform_indices = @transform_4, window_bounds = array<i64: 2, 1, 128>}, {pipeline_mode = #tpu.pipeline_mode<synchronous>, transform_indices = @transform_5, window_bounds = array<i64: 128, 128>}, {pipeline_mode = #tpu.pipeline_mode<synchronous>, transform_indices = @transform_6, window_bounds = array<i64: 1, 128>}, {transform_indices = @transform_7, window_bounds = array<i64: 8, 128>}]} {
    %c0 = arith.constant 0 : index
    %c0_0 = arith.constant 0 : index
    %0 = vector.load %arg1[%c0, %c0_0] : memref<8x128xf32, #tpu.memory_space<vmem>>, vector<8x128xf32>
    %1 = arith.truncf %0 : vector<8x128xf32> to vector<8x128xbf16>
    %c0_1 = arith.constant 0 : index
    %c0_2 = arith.constant 0 : index
    %2 = vector.load %arg2[%c0_1, %c0_2] : memref<128x128xbf16, #tpu.memory_space<vmem>>, vector<128x128xbf16>
    %cst = arith.constant dense<0.000000e+00> : vector<8x128xf32>
    %3 = tpu.matmul %1, %2, %cst {dimension_numbers = #tpu.dot_dimension_numbers<[1], [0], [0], [1], [0, 0, 1, 1], [], []>} : vector<8x128xbf16>, vector<128x128xbf16>, vector<8x128xf32> -> vector<8x128xf32>
    %c0_3 = arith.constant 0 : index
    %c0_4 = arith.constant 0 : index
    %4 = vector.load %arg3[%c0_3, %c0_4] : memref<1x128xf32, #tpu.memory_space<vmem>>, vector<1x128xf32>
    %5 = vector.broadcast %4 : vector<1x128xf32> to vector<8x128xf32>
    %6 = arith.addf %3, %5 : vector<8x128xf32>
    %cst_5 = arith.constant 0.000000e+00 : f32
    %7 = vector.broadcast %cst_5 : f32 to vector<8x128xf32>
    %8 = arith.maximumf %6, %7 : vector<8x128xf32>
    %9 = arith.truncf %8 : vector<8x128xf32> to vector<8x128xbf16>
    %c0_6 = arith.constant 0 : index
    %c0_7 = arith.constant 0 : index
    %c0_8 = arith.constant 0 : index
    %10 = vector.load %arg4[%c0_6, %c0_7, %c0_8] : memref<2x128x128xbf16, #tpu.memory_space<vmem>>, vector<1x128x128xbf16>
    %11 = vector.shape_cast %10 : vector<1x128x128xbf16> to vector<128x128xbf16>
    %cst_9 = arith.constant dense<0.000000e+00> : vector<8x128xf32>
    %12 = tpu.matmul %9, %11, %cst_9 {dimension_numbers = #tpu.dot_dimension_numbers<[1], [0], [0], [1], [0, 0, 1, 1], [], []>} : vector<8x128xbf16>, vector<128x128xbf16>, vector<8x128xf32> -> vector<8x128xf32>
    %c0_10 = arith.constant 0 : index
    %c0_11 = arith.constant 0 : index
    %c0_12 = arith.constant 0 : index
    %13 = vector.load %arg5[%c0_10, %c0_11, %c0_12] : memref<2x1x128xf32, #tpu.memory_space<vmem>>, vector<1x1x128xf32>
    %14 = vector.shape_cast %13 : vector<1x1x128xf32> to vector<1x128xf32>
    %15 = vector.broadcast %14 : vector<1x128xf32> to vector<8x128xf32>
    %16 = arith.addf %12, %15 : vector<8x128xf32>
    %cst_13 = arith.constant 0.000000e+00 : f32
    %17 = vector.broadcast %cst_13 : f32 to vector<8x128xf32>
    %18 = arith.maximumf %16, %17 : vector<8x128xf32>
    %19 = arith.truncf %18 : vector<8x128xf32> to vector<8x128xbf16>
    %c1 = arith.constant 1 : index
    %c0_14 = arith.constant 0 : index
    %c0_15 = arith.constant 0 : index
    %20 = vector.load %arg4[%c1, %c0_14, %c0_15] : memref<2x128x128xbf16, #tpu.memory_space<vmem>>, vector<1x128x128xbf16>
    %21 = vector.shape_cast %20 : vector<1x128x128xbf16> to vector<128x128xbf16>
    %cst_16 = arith.constant dense<0.000000e+00> : vector<8x128xf32>
    %22 = tpu.matmul %19, %21, %cst_16 {dimension_numbers = #tpu.dot_dimension_numbers<[1], [0], [0], [1], [0, 0, 1, 1], [], []>} : vector<8x128xbf16>, vector<128x128xbf16>, vector<8x128xf32> -> vector<8x128xf32>
    %c1_17 = arith.constant 1 : index
    %c0_18 = arith.constant 0 : index
    %c0_19 = arith.constant 0 : index
    %23 = vector.load %arg5[%c1_17, %c0_18, %c0_19] : memref<2x1x128xf32, #tpu.memory_space<vmem>>, vector<1x1x128xf32>
    %24 = vector.shape_cast %23 : vector<1x1x128xf32> to vector<1x128xf32>
    %25 = vector.broadcast %24 : vector<1x128xf32> to vector<8x128xf32>
    %26 = arith.addf %22, %25 : vector<8x128xf32>
    %cst_20 = arith.constant 0.000000e+00 : f32
    %27 = vector.broadcast %cst_20 : f32 to vector<8x128xf32>
    %28 = arith.maximumf %26, %27 : vector<8x128xf32>
    %29 = arith.truncf %28 : vector<8x128xf32> to vector<8x128xbf16>
    %c0_21 = arith.constant 0 : index
    %c0_22 = arith.constant 0 : index
    %30 = vector.load %arg6[%c0_21, %c0_22] : memref<128x128xbf16, #tpu.memory_space<vmem>>, vector<128x128xbf16>
    %cst_23 = arith.constant dense<0.000000e+00> : vector<8x128xf32>
    %31 = tpu.matmul %29, %30, %cst_23 {dimension_numbers = #tpu.dot_dimension_numbers<[1], [0], [0], [1], [0, 0, 1, 1], [], []>} : vector<8x128xbf16>, vector<128x128xbf16>, vector<8x128xf32> -> vector<8x128xf32>
    %c0_24 = arith.constant 0 : index
    %c0_25 = arith.constant 0 : index
    %32 = vector.load %arg7[%c0_24, %c0_25] : memref<1x128xf32, #tpu.memory_space<vmem>>, vector<1x128xf32>
    %33 = vector.broadcast %32 : vector<1x128xf32> to vector<8x128xf32>
    %34 = arith.addf %31, %33 : vector<8x128xf32>
    %c0_26 = arith.constant 0 : index
    %c0_27 = arith.constant 0 : index
    %35 = vector.load %arg8[%c0_26, %c0_27] : memref<8x128xf32, #tpu.memory_space<vmem>>, vector<8x128xf32>
    tpu.vector_store %arg8[%c0_26, %c0_27], %34 {strides = array<i32>} : memref<8x128xf32, #tpu.memory_space<vmem>>, vector<8x128xf32>,
    return
  }
  func.func @transform_0(%arg0: i32) -> (i32, i32) {
    %c0_i32 = arith.constant 0 : i32
    %c0_i32_0 = arith.constant 0 : i32
    return %arg0, %c0_i32 : i32, i32
  }
  func.func @transform_1(%arg0: i32) -> (i32, i32) {
    %c0_i32 = arith.constant 0 : i32
    %c0_i32_0 = arith.constant 0 : i32
    %c0_i32_1 = arith.constant 0 : i32
    return %c0_i32, %c0_i32_0 : i32, i32
  }
  func.func @transform_2(%arg0: i32) -> (i32, i32) {
    %c0_i32 = arith.constant 0 : i32
    %c0_i32_0 = arith.constant 0 : i32
    %c0_i32_1 = arith.constant 0 : i32
    return %c0_i32, %c0_i32_0 : i32, i32
  }
  func.func @transform_3(%arg0: i32) -> (i32, i32, i32) {
    %c0_i32 = arith.constant 0 : i32
    %c0_i32_0 = arith.constant 0 : i32
    %c0_i32_1 = arith.constant 0 : i32
    %c0_i32_2 = arith.constant 0 : i32
    return %c0_i32, %c0_i32_0, %c0_i32_1 : i32, i32, i32
  }
  func.func @transform_4(%arg0: i32) -> (i32, i32, i32) {
    %c0_i32 = arith.constant 0 : i32
    %c0_i32_0 = arith.constant 0 : i32
    %c0_i32_1 = arith.constant 0 : i32
    %c0_i32_2 = arith.constant 0 : i32
    return %c0_i32, %c0_i32_0, %c0_i32_1 : i32, i32, i32
  }
  func.func @transform_5(%arg0: i32) -> (i32, i32) {
    %c0_i32 = arith.constant 0 : i32
    %c0_i32_0 = arith.constant 0 : i32
    %c0_i32_1 = arith.constant 0 : i32
    return %c0_i32, %c0_i32_0 : i32, i32
  }
  func.func @transform_6(%arg0: i32) -> (i32, i32) {
    %c0_i32 = arith.constant 0 : i32
    %c0_i32_0 = arith.constant 0 : i32
    %c0_i32_1 = arith.constant 0 : i32
    return %c0_i32, %c0_i32_0 : i32, i32
  }
  func.func @transform_7(%arg0: i32) -> (i32, i32) {
    %c0_i32 = arith.constant 0 : i32
    %c0_i32_0 = arith.constant 0 : i32
    return %arg0, %c0_i32 : i32, i32
  }
}

module attributes {stable_mosaic.version = 11 : i64} {
  func.func @_mlp_kernel(%arg0: i32, %arg1: memref<8x128xf32, #tpu.memory_space<vmem>>, %arg2: memref<128x128xbf16, #tpu.memory_space<vmem>>, %arg3: memref<1x128xf32, #tpu.memory_space<vmem>>, %arg4: memref<2x128x128xbf16, #tpu.memory_space<vmem>>, %arg5: memref<2x1x128xf32, #tpu.memory_space<vmem>>, %arg6: memref<128x128xbf16, #tpu.memory_space<vmem>>, %arg7: memref<1x128xf32, #tpu.memory_space<vmem>>, %arg8: memref<8x128xf32, #tpu.memory_space<vmem>>) attributes {dimension_semantics = [#tpu.dimension_semantics<parallel>], iteration_bounds = array<i64: 1>, scalar_prefetch = 0 : i64, scratch_operands = 0 : i64, tpu.core_type = #tpu.core_type<tc>, window_params = [{transform_indices = @transform_0, window_bounds = array<i64: 8, 128>}, {pipeline_mode = #tpu.pipeline_mode<synchronous>, transform_indices = @transform_1, window_bounds = array<i64: 128, 128>}, {pipeline_mode = #tpu.pipeline_mode<synchronous>, transform_indices = @transform_2, window_bounds = array<i64: 1, 128>}, {pipeline_mode = #tpu.pipeline_mode<synchronous>, transform_indices = @transform_3, window_bounds = array<i64: 2, 128, 128>}, {pipeline_mode = #tpu.pipeline_mode<synchronous>, transform_indices = @transform_4, window_bounds = array<i64: 2, 1, 128>}, {pipeline_mode = #tpu.pipeline_mode<synchronous>, transform_indices = @transform_5, window_bounds = array<i64: 128, 128>}, {pipeline_mode = #tpu.pipeline_mode<synchronous>, transform_indices = @transform_6, window_bounds = array<i64: 1, 128>}, {transform_indices = @transform_7, window_bounds = array<i64: 8, 128>}]} {
    %c0 = arith.constant 0 : index
    %c0_0 = arith.constant 0 : index
    %0 = vector.load %arg1[%c0, %c0_0] : memref<8x128xf32, #tpu.memory_space<vmem>>, vector<8x128xf32>
    %1 = arith.truncf %0 : vector<8x128xf32> to vector<8x128xbf16>
    %c0_1 = arith.constant 0 : index
    %c0_2 = arith.constant 0 : index
    %2 = vector.load %arg2[%c0_1, %c0_2] : memref<128x128xbf16, #tpu.memory_space<vmem>>, vector<128x128xbf16>
    %cst = arith.constant dense<0.000000e+00> : vector<8x128xf32>
    %3 = tpu.matmul %1, %2, %cst {dimension_numbers = #tpu.dot_dimension_numbers<[1], [0], [0], [1], [0, 0, 1, 1], [], []>} : vector<8x128xbf16>, vector<128x128xbf16>, vector<8x128xf32> -> vector<8x128xf32>
    %c0_3 = arith.constant 0 : index
    %c0_4 = arith.constant 0 : index
    %4 = vector.load %arg3[%c0_3, %c0_4] : memref<1x128xf32, #tpu.memory_space<vmem>>, vector<1x128xf32>
    %5 = vector.broadcast %4 : vector<1x128xf32> to vector<8x128xf32>
    %6 = arith.addf %3, %5 : vector<8x128xf32>
    %cst_5 = arith.constant 0.000000e+00 : f32
    %7 = vector.broadcast %cst_5 : f32 to vector<8x128xf32>
    %8 = arith.maximumf %6, %7 : vector<8x128xf32>
    %9 = arith.truncf %8 : vector<8x128xf32> to vector<8x128xbf16>
    %c0_6 = arith.constant 0 : index
    %c0_7 = arith.constant 0 : index
    %c0_8 = arith.constant 0 : index
    %10 = vector.load %arg4[%c0_6, %c0_7, %c0_8] : memref<2x128x128xbf16, #tpu.memory_space<vmem>>, vector<1x128x128xbf16>
    %11 = vector.shape_cast %10 : vector<1x128x128xbf16> to vector<128x128xbf16>
    %cst_9 = arith.constant dense<0.000000e+00> : vector<8x128xf32>
    %12 = tpu.matmul %9, %11, %cst_9 {dimension_numbers = #tpu.dot_dimension_numbers<[1], [0], [0], [1], [0, 0, 1, 1], [], []>} : vector<8x128xbf16>, vector<128x128xbf16>, vector<8x128xf32> -> vector<8x128xf32>
    %c0_10 = arith.constant 0 : index
    %c0_11 = arith.constant 0 : index
    %c0_12 = arith.constant 0 : index
    %13 = vector.load %arg5[%c0_10, %c0_11, %c0_12] : memref<2x1x128xf32, #tpu.memory_space<vmem>>, vector<1x1x128xf32>
    %14 = vector.shape_cast %13 : vector<1x1x128xf32> to vector<1x128xf32>
    %15 = vector.broadcast %14 : vector<1x128xf32> to vector<8x128xf32>
    %16 = arith.addf %12, %15 : vector<8x128xf32>
    %cst_13 = arith.constant 0.000000e+00 : f32
    %17 = vector.broadcast %cst_13 : f32 to vector<8x128xf32>
    %18 = arith.maximumf %16, %17 : vector<8x128xf32>
    %19 = arith.truncf %18 : vector<8x128xf32> to vector<8x128xbf16>
    %c1 = arith.constant 1 : index
    %c0_14 = arith.constant 0 : index
    %c0_15 = arith.constant 0 : index
    %20 = vector.load %arg4[%c1, %c0_14, %c0_15] : memref<2x128x128xbf16, #tpu.memory_space<vmem>>, vector<1x128x128xbf16>
    %21 = vector.shape_cast %20 : vector<1x128x128xbf16> to vector<128x128xbf16>
    %cst_16 = arith.constant dense<0.000000e+00> : vector<8x128xf32>
    %22 = tpu.matmul %19, %21, %cst_16 {dimension_numbers = #tpu.dot_dimension_numbers<[1], [0], [0], [1], [0, 0, 1, 1], [], []>} : vector<8x128xbf16>, vector<128x128xbf16>, vector<8x128xf32> -> vector<8x128xf32>
    %c1_17 = arith.constant 1 : index
    %c0_18 = arith.constant 0 : index
    %c0_19 = arith.constant 0 : index
    %23 = vector.load %arg5[%c1_17, %c0_18, %c0_19] : memref<2x1x128xf32, #tpu.memory_space<vmem>>, vector<1x1x128xf32>
    %24 = vector.shape_cast %23 : vector<1x1x128xf32> to vector<1x128xf32>
    %25 = vector.broadcast %24 : vector<1x128xf32> to vector<8x128xf32>
    %26 = arith.addf %22, %25 : vector<8x128xf32>
    %cst_20 = arith.constant 0.000000e+00 : f32
    %27 = vector.broadcast %cst_20 : f32 to vector<8x128xf32>
    %28 = arith.maximumf %26, %27 : vector<8x128xf32>
    %29 = arith.truncf %28 : vector<8x128xf32> to vector<8x128xbf16>
    %c0_21 = arith.constant 0 : index
    %c0_22 = arith.constant 0 : index
    %30 = vector.load %arg6[%c0_21, %c0_22] : memref<128x128xbf16, #tpu.memory_space<vmem>>, vector<128x128xbf16>
    %cst_23 = arith.constant dense<0.000000e+00> : vector<8x128xf32>
    %31 = tpu.matmul %29, %30, %cst_23 {dimension_numbers = #tpu.dot_dimension_numbers<[1], [0], [0], [1], [0, 0, 1, 1], [], []>} : vector<8x128xbf16>, vector<128x128xbf16>, vector<8x128xf32> -> vector<8x128xf32>
    %c0_24 = arith.constant 0 : index
    %c0_25 = arith.constant 0 : index
    %32 = vector.load %arg7[%c0_24, %c0_25] : memref<1x128xf32, #tpu.memory_space<vmem>>, vector<1x128xf32>
    %33 = vector.broadcast %32 : vector<1x128xf32> to vector<8x128xf32>
    %34 = arith.addf %31, %33 : vector<8x128xf32>
    %c0_26 = arith.constant 0 : index
    %c0_27 = arith.constant 0 : index
    %35 = vector.load %arg8[%c0_26, %c0_27] : memref<8x128xf32, #tpu.memory_space<vmem>>, vector<8x128xf32>
    tpu.vector_store %arg8[%c0_26, %c0_27], %34 {strides = array<i32>} : memref<8x128xf32, #tpu.memory_space<vmem>>, vector<8x128xf32>,
    return
  }
  func.func @transform_0(%arg0: i32) -> (i32, i32) {
    %c0_i32 = arith.constant 0 : i32
    %c0_i32_0 = arith.constant 0 : i32
    return %arg0, %c0_i32 : i32, i32
  }
  func.func @transform_1(%arg0: i32) -> (i32, i32) {
    %c0_i32 = arith.constant 0 : i32
    %c0_i32_0 = arith.constant 0 : i32
    %c0_i32_1 = arith.constant 0 : i32
    return %c0_i32, %c0_i32_0 : i32, i32
  }
  func.func @transform_2(%arg0: i32) -> (i32, i32) {
    %c0_i32 = arith.constant 0 : i32
    %c0_i32_0 = arith.constant 0 : i32
    %c0_i32_1 = arith.constant 0 : i32
    return %c0_i32, %c0_i32_0 : i32, i32
  }
  func.func @transform_3(%arg0: i32) -> (i32, i32, i32) {
    %c0_i32 = arith.constant 0 : i32
    %c0_i32_0 = arith.constant 0 : i32
    %c0_i32_1 = arith.constant 0 : i32
    %c0_i32_2 = arith.constant 0 : i32
    return %c0_i32, %c0_i32_0, %c0_i32_1 : i32, i32, i32
  }
  func.func @transform_4(%arg0: i32) -> (i32, i32, i32) {
    %c0_i32 = arith.constant 0 : i32
    %c0_i32_0 = arith.constant 0 : i32
    %c0_i32_1 = arith.constant 0 : i32
    %c0_i32_2 = arith.constant 0 : i32
    return %c0_i32, %c0_i32_0, %c0_i32_1 : i32, i32, i32
  }
  func.func @transform_5(%arg0: i32) -> (i32, i32) {
    %c0_i32 = arith.constant 0 : i32
    %c0_i32_0 = arith.constant 0 : i32
    %c0_i32_1 = arith.constant 0 : i32
    return %c0_i32, %c0_i32_0 : i32, i32
  }
  func.func @transform_6(%arg0: i32) -> (i32, i32) {
    %c0_i32 = arith.constant 0 : i32
    %c0_i32_0 = arith.constant 0 : i32
    %c0_i32_1 = arith.constant 0 : i32
    return %c0_i32, %c0_i32_0 : i32, i32
  }
  func.func @transform_7(%arg0: i32) -> (i32, i32) {
    %c0_i32 = arith.constant 0 : i32
    %c0_i32_0 = arith.constant 0 : i32
    return %arg0, %c0_i32 : i32, i32
  }
}

</mosaic_0001>

<bundles_post_ra>
// kernel: tpu_custom_call.1
= control target key start
LH: loop header
LB: loop body
LE: loop exit
PB: predicated region body
PF: predicated region fallthrough
CT: control target
= control target key end

     0   :  { %12 = vsyncpa [#allocation3], 0  ;;  %s816_s0 = inlined_call_operand.hbm [shape: f32[8,128], index: 0, kind: input, shape index: {}]   ;;  %s817_s1 = inlined_call_operand.hbm [shape: bf16[128,128], index: 1, kind: input, shape index: {}]   ;;  %s818_s2 = inlined_call_operand.vmem [shape: f32[1,128], index: 2, kind: input, shape index: {}]   ;;  %s819_s3 = inlined_call_operand.hbm [shape: bf16[2,128,128], index: 3, kind: input, shape index: {}]   ;;  %s820_s4 = inlined_call_operand.vmem [shape: f32[2,1,128], index: 4, kind: input, shape index: {}]   ;;  %s821_s5 = inlined_call_operand.hbm [shape: bf16[128,128], index: 5, kind: input, shape index: {}]   ;;  %s822_s6 = inlined_call_operand.vmem [shape: f32[1,128], index: 6, kind: input, shape index: {}]   ;;  %s823_s7 = inlined_call_operand.hbm [shape: f32[8,128], index: 7, kind: output, shape index: {}]  }
   0x1   :  { %13 = vsyncpa [#allocation6], 0 }
   0x2   :  { %14 = vsyncpa [#allocation9], 0  ;;  %s31_s26 = sshll.u32 %s817_s1, 4  ;;  %s32_s26 = int_to_ptr.hbm [resolvable:$true] %s31_s26 }
   0x3   :  { %15 = vsyncpa [#allocation4], 0  ;;  %s742_s27 = smov [#allocation5]   ;;  %s21_s8 = sshll.u32 %s816_s0, 4  ;;  %s22_s8 = int_to_ptr.hbm [resolvable:$true] %s21_s8 }
   0x4   :  { %s33_s28 = sshll.u32 %s742_s27, 4  ;;  %s743_s9 = smov 64   ;;  %s34_s28 = int_to_ptr.vmem [resolvable:$true] %s33_s28 }
   0x5   :  { %s744_s10 = smov 4   ;;  %s745_s11 = smov [#allocation2]  }
   0x6   :  { %39 = dma.hbm_to_vmem [thread:$0]  %s32_s26, 1024, %s34_s28, [#allocation6], %s743_s9, %s743_s9, %s744_s10  }
   0x7   :  { %s23_s12 = sshll.u32 %s745_s11, 4  ;;  %s46_s15 = sshll.u32 %s819_s3, 4  ;;  %s24_s12 = int_to_ptr.vmem [resolvable:$true] %s23_s12  ;;  %s47_s15 = int_to_ptr.hbm [resolvable:$true] %s46_s15 }
   0x8   :  { %26 = dma.hbm_to_vmem [thread:$0]  %s22_s8, 128, %s24_s12, [#allocation3]  }
   0x9   :  { %s61_s17 = sshll.u32 %s821_s5, 4  ;;  %s746_s18 = smov [#allocation7]   ;;  %s62_s17 = int_to_ptr.hbm [resolvable:$true] %s61_s17 }
   0xa   :  { %s48_s19 = sshll.u32 %s746_s18, 4  ;;  %s747_s0 = smov [#allocation8]   ;;  %s49_s19 = int_to_ptr.vmem [resolvable:$true] %s48_s19 }
   0xb   :  { %54 = dma.hbm_to_vmem [thread:$0]  %s47_s15, 2048, %s49_s19, [#allocation6], %s743_s9, %s743_s9, %s744_s10  }
   0xc   :  { %s63_s20 = sshll.u32 %s747_s0, 4  ;;  %s64_s20 = int_to_ptr.vmem [resolvable:$true] %s63_s20 }
   0xd   :  { %69 = dma.hbm_to_vmem [thread:$0]  %s62_s17, 1024, %s64_s20, [#allocation9], %s743_s9, %s743_s9, %s744_s10  }
   0xe   :  { %734 = dma.done.wait [#allocation3], 128  }
   0xf   :  { %735 = vsyncadd [#allocation3], 4294967168 }
  0x10   :  { %736 = dma.done.wait [#allocation6], 3072  }
  0x11   :  { %737 = vsyncadd [#allocation6], 4294964224 }
  0x12   :  { %738 = dma.done.wait [#allocation9], 1024  }
  0x13   :  { %739 = vsyncadd [#allocation9], 4294966272  ;;  %v578_v0 = vld [vmem:[#allocation5 + $0x38] sm:$0xff]  ;;  %v577_v1 = vld [vmem:[#allocation5 + $0x30] sm:$0xff]  ;;  %s748_s26 = smov [#allocation10]   ;;  %s430_s30 = sshll.u32 %s823_s7, 4  ;;  %s431_s30 = int_to_ptr.hbm [resolvable:$true] %s430_s30 }
  0x14   :  { %158 = vmatpush.bf16.msra.mxu0 %v578_v0  ;;  %v586_v2 = vld [vmem:[#allocation7 + $0x38] sm:$0xff]  ;;  %v585_v3 = vld [vmem:[#allocation7 + $0x30] sm:$0xff]  ;;  %v576_v4 = vld [vmem:[#allocation5 + $0x28] sm:$0xff]  ;;  %s428_s27 = sshll.u32 %s748_s26, 4  ;;  %s429_s27 = int_to_ptr.vmem [resolvable:$true] %s428_s27 }
  0x15   :  { %241 = vmatpush.bf16.msra.mxu1 %v586_v2  ;;  %v584_v5 = vld [vmem:[#allocation7 + $0x28] sm:$0xff]  ;;  %v575_v6 = vld [vmem:[#allocation5 + $0x20] sm:$0xff]  ;;  %v574_v8 = vld [vmem:[#allocation5 + $0x18] sm:$0xff] }
  0x16   :  { %v583_v7 = vld [vmem:[#allocation7 + $0x20] sm:$0xff]  ;;  %v582_v9 = vld [vmem:[#allocation7 + $0x18] sm:$0xff]  ;;  %v573_v10 = vld [vmem:[#allocation5 + $0x10] sm:$0xff] }
  0x17   :  { %v581_v11 = vld [vmem:[#allocation7 + $0x10] sm:$0xff]  ;;  %v572_v12 = vld [vmem:[#allocation5 + $0x8] sm:$0xff]  ;;  %v571_v13 = vld [vmem:[#allocation5] sm:$0xff] }
  0x18   :  { %159 = vmatpush.bf16.msra.mxu0 %v577_v1  ;;  %v88_v14 = vld [vmem:[#allocation2] sm:$0xff]  ;;  %v580_v16 = vld [vmem:[#allocation7 + $0x8] sm:$0xff]  ;;  %v579_v17 = vld [vmem:[#allocation7] sm:$0xff] }
  0x19   :  { %242 = vmatpush.bf16.msra.mxu1 %v585_v3  ;;  %v89_v15 = vpack.c.bf16 %v88_v14, %v88_v14  ;;  %v594_v18 = vld [vmem:[#allocation7 + $0x78] sm:$0xff]  ;;  %v593_v19 = vld [vmem:[#allocation7 + $0x70] sm:$0xff]  ;;  %v592_v20 = vld [vmem:[#allocation7 + $0x68] sm:$0xff] }
  0x1a   :  { %326 = vmatpush.bf16.msra.mxu2 %v594_v18  ;;  %v591_v21 = vld [vmem:[#allocation7 + $0x60] sm:$0xff]  ;;  %v590_v22 = vld [vmem:[#allocation7 + $0x58] sm:$0xff]  ;;  %v589_v23 = vld [vmem:[#allocation7 + $0x50] sm:$0xff] }
  0x1b   :  { %v610_v24 = vld [vmem:[%s818_s2] ss:$0 sm:$0xff]  ;;  %v588_v30 = vld [vmem:[#allocation7 + $0x48] sm:$0xff]  ;;  %v587_v31 = vld [vmem:[#allocation7 + $0x40] sm:$0xff] }
  0x1c   :  { %160 = vmatpush.bf16.msra.mxu0 %v576_v4  ;;  %v602_v32 = vld [vmem:[#allocation8 + $0x38] sm:$0xff]  ;;  %v601_v33 = vld [vmem:[#allocation8 + $0x30] sm:$0xff]  ;;  %v600_v34 = vld [vmem:[#allocation8 + $0x28] sm:$0xff] }
  0x1d   :  { %243 = vmatpush.bf16.msra.mxu1 %v584_v5  ;;  %409 = vmatpush.bf16.msra.mxu3 %v602_v32  ;;  %v599_v35 = vld [vmem:[#allocation8 + $0x20] sm:$0xff]  ;;  %v598_v36 = vld [vmem:[#allocation8 + $0x18] sm:$0xff]  ;;  %v597_v37 = vld [vmem:[#allocation8 + $0x10] sm:$0xff] }
  0x1e   :  { %327 = vmatpush.bf16.msra.mxu2 %v593_v19  ;;  %v611_v38 = vld [vmem:[%s820_s4] ss:$0 sm:$0xff]  ;;  %v596_v44 = vld [vmem:[#allocation8 + $0x8] sm:$0xff]  ;;  %v595_v45 = vld [vmem:[#allocation8] sm:$0xff] }
  0x1f   :  { %v612_v46 = vld [vmem:[%s820_s4 + $0x1] ss:$0 sm:$0xff]  ;;  %v613_v52 = vld [vmem:[%s822_s6] ss:$0 sm:$0xff] }
  0x20   :  { %161 = vmatpush.bf16.msra.mxu0 %v575_v6 }
  0x21   :  { %244 = vmatpush.bf16.msra.mxu1 %v583_v7  ;;  %410 = vmatpush.bf16.msra.mxu3 %v601_v33 }
  0x22   :  { %328 = vmatpush.bf16.msra.mxu2 %v592_v20 }
  0x24   :  { %162 = vmatpush.bf16.msra.mxu0 %v574_v8 }
  0x25   :  { %245 = vmatpush.bf16.msra.mxu1 %v582_v9  ;;  %411 = vmatpush.bf16.msra.mxu3 %v600_v34 }
  0x26   :  { %329 = vmatpush.bf16.msra.mxu2 %v591_v21 }
  0x28   :  { %163 = vmatpush.bf16.msra.mxu0 %v573_v10 }
  0x29   :  { %246 = vmatpush.bf16.msra.mxu1 %v581_v11  ;;  %412 = vmatpush.bf16.msra.mxu3 %v599_v35 }
  0x2a   :  { %330 = vmatpush.bf16.msra.mxu2 %v590_v22 }
  0x2c   :  { %164 = vmatpush.bf16.msra.mxu0 %v572_v12 }
  0x2d   :  { %247 = vmatpush.bf16.msra.mxu1 %v580_v16  ;;  %413 = vmatpush.bf16.msra.mxu3 %v598_v36 }
  0x2e   :  { %331 = vmatpush.bf16.msra.mxu2 %v589_v23 }
  0x30   :  { %165 = vmatpush.bf16.msra.mxu0 %v571_v13 }
  0x31   :  { %248 = vmatpush.bf16.msra.mxu1 %v579_v17  ;;  %414 = vmatpush.bf16.msra.mxu3 %v597_v37 }
  0x32   :  { %332 = vmatpush.bf16.msra.mxu2 %v588_v30 }
  0x33   :  { %166 = vmatmul.bf16.vlgmr.msra.gmra.mxu0 %v89_v15 }
  0x35   :  { %415 = vmatpush.bf16.msra.mxu3 %v596_v44 }
  0x36   :  { %333 = vmatpush.bf16.msra.mxu2 %v587_v31 }
  0x39   :  { %416 = vmatpush.bf16.msra.mxu3 %v595_v45 }
  0xb0   :  { %v167_v25 = vpop.f32.mrf.mxu0 }
  0xb1   :  { %v168_v26 = vadd.f32 %v610_v24, %v167_v25 }
  0xb3   :  { %v171_v27 = vmax.f32 %v168_v26, 0.0 }
  0xb5   :  { %v172_v28 = vpack.c.bf16 %v171_v27, %v171_v27 }
  0xb7   :  { %249 = vmatmul.bf16.vlgmr.msra.gmra.mxu1 %v172_v28 }
  0xb8   :  { %v169_v29 = vpop.f32.mrf.mxu0 }
 0x134   :  { %v250_v39 = vpop.f32.mrf.mxu1 }
 0x135   :  { %v251_v40 = vadd.f32 %v611_v38, %v250_v39 }
 0x137   :  { %v254_v41 = vmax.f32 %v251_v40, 0.0 }
 0x139   :  { %v255_v42 = vpack.c.bf16 %v254_v41, %v254_v41 }
 0x13b   :  { %334 = vmatmul.bf16.vlgmr.msra.gmra.mxu2 %v255_v42 }
 0x13c   :  { %v252_v43 = vpop.f32.mrf.mxu1 }
 0x1be   :  { %v335_v47 = vpop.f32.mrf.mxu2 }
 0x1bf   :  { %v336_v48 = vadd.f32 %v612_v46, %v335_v47 }
 0x1c1   :  { %v339_v49 = vmax.f32 %v336_v48, 0.0 }
 0x1c3   :  { %v340_v50 = vpack.c.bf16 %v339_v49, %v339_v49 }
 0x1c5   :  { %417 = vmatmul.bf16.vlgmr.msra.gmra.mxu3 %v340_v50 }
 0x1c6   :  { %v337_v51 = vpop.f32.mrf.mxu2 }
 0x248   :  { %v418_v53 = vpop.f32.mrf.mxu3 }
 0x249   :  { %v419_v54 = vadd.f32 %v613_v52, %v418_v53 }
 0x24b   :  { %422 = vst [vmem:[#allocation10] sm:$0xff] %v419_v54 }
 0x24c   :  { %433 = dma.vmem_to_hbm [thread:$0]  %s429_s27, 128, %s431_s30, [#allocation4]  }
 0x250   :  { %v420_v55 = vpop.f32.mrf.mxu3 }
 0x251   :  { %740 = dma.done.wait [#allocation4], 128  }
 0x252   :  { %741 = vsyncadd [#allocation4], 4294967168 }
 0x253   :  { %438 = vsyncpa [#allocation3], 1 }
 0x254   :  { %439 = vsyncpa [#allocation6], 1 }
 0x255   :  { %440 = vsyncpa [#allocation9], 1 }
 0x256   :  { %441 = vsyncpa [#allocation4], 1 }

// kernel: tpu_custom_call.1
= control target key start
LH: loop header
LB: loop body
LE: loop exit
PB: predicated region body
PF: predicated region fallthrough
CT: control target
= control target key end

     0   :  { %12 = vsyncpa [#allocation3], 0  ;;  %s816_s0 = inlined_call_operand.hbm [shape: f32[8,128], index: 0, kind: input, shape index: {}]   ;;  %s817_s1 = inlined_call_operand.hbm [shape: bf16[128,128], index: 1, kind: input, shape index: {}]   ;;  %s818_s2 = inlined_call_operand.vmem [shape: f32[1,128], index: 2, kind: input, shape index: {}]   ;;  %s819_s3 = inlined_call_operand.hbm [shape: bf16[2,128,128], index: 3, kind: input, shape index: {}]   ;;  %s820_s4 = inlined_call_operand.vmem [shape: f32[2,1,128], index: 4, kind: input, shape index: {}]   ;;  %s821_s5 = inlined_call_operand.hbm [shape: bf16[128,128], index: 5, kind: input, shape index: {}]   ;;  %s822_s6 = inlined_call_operand.vmem [shape: f32[1,128], index: 6, kind: input, shape index: {}]   ;;  %s823_s7 = inlined_call_operand.hbm [shape: f32[8,128], index: 7, kind: output, shape index: {}]  }
   0x1   :  { %13 = vsyncpa [#allocation6], 0 }
   0x2   :  { %14 = vsyncpa [#allocation9], 0  ;;  %s31_s26 = sshll.u32 %s817_s1, 4  ;;  %s32_s26 = int_to_ptr.hbm [resolvable:$true] %s31_s26 }
   0x3   :  { %15 = vsyncpa [#allocation4], 0  ;;  %s742_s27 = smov [#allocation5]   ;;  %s21_s8 = sshll.u32 %s816_s0, 4  ;;  %s22_s8 = int_to_ptr.hbm [resolvable:$true] %s21_s8 }
   0x4   :  { %s33_s28 = sshll.u32 %s742_s27, 4  ;;  %s743_s9 = smov 64   ;;  %s34_s28 = int_to_ptr.vmem [resolvable:$true] %s33_s28 }
   0x5   :  { %s744_s10 = smov 4   ;;  %s745_s11 = smov [#allocation2]  }
   0x6   :  { %39 = dma.hbm_to_vmem [thread:$0]  %s32_s26, 1024, %s34_s28, [#allocation6], %s743_s9, %s743_s9, %s744_s10  }
   0x7   :  { %s23_s12 = sshll.u32 %s745_s11, 4  ;;  %s46_s15 = sshll.u32 %s819_s3, 4  ;;  %s24_s12 = int_to_ptr.vmem [resolvable:$true] %s23_s12  ;;  %s47_s15 = int_to_ptr.hbm [resolvable:$true] %s46_s15 }
   0x8   :  { %26 = dma.hbm_to_vmem [thread:$0]  %s22_s8, 128, %s24_s12, [#allocation3]  }
   0x9   :  { %s61_s17 = sshll.u32 %s821_s5, 4  ;;  %s746_s18 = smov [#allocation7]   ;;  %s62_s17 = int_to_ptr.hbm [resolvable:$true] %s61_s17 }
   0xa   :  { %s48_s19 = sshll.u32 %s746_s18, 4  ;;  %s747_s0 = smov [#allocation8]   ;;  %s49_s19 = int_to_ptr.vmem [resolvable:$true] %s48_s19 }
   0xb   :  { %54 = dma.hbm_to_vmem [thread:$0]  %s47_s15, 2048, %s49_s19, [#allocation6], %s743_s9, %s743_s9, %s744_s10  }
   0xc   :  { %s63_s20 = sshll.u32 %s747_s0, 4  ;;  %s64_s20 = int_to_ptr.vmem [resolvable:$true] %s63_s20 }
   0xd   :  { %69 = dma.hbm_to_vmem [thread:$0]  %s62_s17, 1024, %s64_s20, [#allocation9], %s743_s9, %s743_s9, %s744_s10  }
   0xe   :  { %734 = dma.done.wait [#allocation3], 128  }
   0xf   :  { %735 = vsyncadd [#allocation3], 4294967168 }
  0x10   :  { %736 = dma.done.wait [#allocation6], 3072  }
  0x11   :  { %737 = vsyncadd [#allocation6], 4294964224 }
  0x12   :  { %738 = dma.done.wait [#allocation9], 1024  }
  0x13   :  { %739 = vsyncadd [#allocation9], 4294966272  ;;  %v578_v0 = vld [vmem:[#allocation5 + $0x38] sm:$0xff]  ;;  %v577_v1 = vld [vmem:[#allocation5 + $0x30] sm:$0xff]  ;;  %s748_s26 = smov [#allocation10]   ;;  %s430_s30 = sshll.u32 %s823_s7, 4  ;;  %s431_s30 = int_to_ptr.hbm [resolvable:$true] %s430_s30 }
  0x14   :  { %158 = vmatpush.bf16.msra.mxu0 %v578_v0  ;;  %v586_v2 = vld [vmem:[#allocation7 + $0x38] sm:$0xff]  ;;  %v585_v3 = vld [vmem:[#allocation7 + $0x30] sm:$0xff]  ;;  %v576_v4 = vld [vmem:[#allocation5 + $0x28] sm:$0xff]  ;;  %s428_s27 = sshll.u32 %s748_s26, 4  ;;  %s429_s27 = int_to_ptr.vmem [resolvable:$true] %s428_s27 }
  0x15   :  { %241 = vmatpush.bf16.msra.mxu1 %v586_v2  ;;  %v584_v5 = vld [vmem:[#allocation7 + $0x28] sm:$0xff]  ;;  %v575_v6 = vld [vmem:[#allocation5 + $0x20] sm:$0xff]  ;;  %v574_v8 = vld [vmem:[#allocation5 + $0x18] sm:$0xff] }
  0x16   :  { %v583_v7 = vld [vmem:[#allocation7 + $0x20] sm:$0xff]  ;;  %v582_v9 = vld [vmem:[#allocation7 + $0x18] sm:$0xff]  ;;  %v573_v10 = vld [vmem:[#allocation5 + $0x10] sm:$0xff] }
  0x17   :  { %v581_v11 = vld [vmem:[#allocation7 + $0x10] sm:$0xff]  ;;  %v572_v12 = vld [vmem:[#allocation5 + $0x8] sm:$0xff]  ;;  %v571_v13 = vld [vmem:[#allocation5] sm:$0xff] }
  0x18   :  { %159 = vmatpush.bf16.msra.mxu0 %v577_v1  ;;  %v88_v14 = vld [vmem:[#allocation2] sm:$0xff]  ;;  %v580_v16 = vld [vmem:[#allocation7 + $0x8] sm:$0xff]  ;;  %v579_v17 = vld [vmem:[#allocation7] sm:$0xff] }
  0x19   :  { %242 = vmatpush.bf16.msra.mxu1 %v585_v3  ;;  %v89_v15 = vpack.c.bf16 %v88_v14, %v88_v14  ;;  %v594_v18 = vld [vmem:[#allocation7 + $0x78] sm:$0xff]  ;;  %v593_v19 = vld [vmem:[#allocation7 + $0x70] sm:$0xff]  ;;  %v592_v20 = vld [vmem:[#allocation7 + $0x68] sm:$0xff] }
  0x1a   :  { %326 = vmatpush.bf16.msra.mxu2 %v594_v18  ;;  %v591_v21 = vld [vmem:[#allocation7 + $0x60] sm:$0xff]  ;;  %v590_v22 = vld [vmem:[#allocation7 + $0x58] sm:$0xff]  ;;  %v589_v23 = vld [vmem:[#allocation7 + $0x50] sm:$0xff] }
  0x1b   :  { %v610_v24 = vld [vmem:[%s818_s2] ss:$0 sm:$0xff]  ;;  %v588_v30 = vld [vmem:[#allocation7 + $0x48] sm:$0xff]  ;;  %v587_v31 = vld [vmem:[#allocation7 + $0x40] sm:$0xff] }
  0x1c   :  { %160 = vmatpush.bf16.msra.mxu0 %v576_v4  ;;  %v602_v32 = vld [vmem:[#allocation8 + $0x38] sm:$0xff]  ;;  %v601_v33 = vld [vmem:[#allocation8 + $0x30] sm:$0xff]  ;;  %v600_v34 = vld [vmem:[#allocation8 + $0x28] sm:$0xff] }
  0x1d   :  { %243 = vmatpush.bf16.msra.mxu1 %v584_v5  ;;  %409 = vmatpush.bf16.msra.mxu3 %v602_v32  ;;  %v599_v35 = vld [vmem:[#allocation8 + $0x20] sm:$0xff]  ;;  %v598_v36 = vld [vmem:[#allocation8 + $0x18] sm:$0xff]  ;;  %v597_v37 = vld [vmem:[#allocation8 + $0x10] sm:$0xff] }
  0x1e   :  { %327 = vmatpush.bf16.msra.mxu2 %v593_v19  ;;  %v611_v38 = vld [vmem:[%s820_s4] ss:$0 sm:$0xff]  ;;  %v596_v44 = vld [vmem:[#allocation8 + $0x8] sm:$0xff]  ;;  %v595_v45 = vld [vmem:[#allocation8] sm:$0xff] }
  0x1f   :  { %v612_v46 = vld [vmem:[%s820_s4 + $0x1] ss:$0 sm:$0xff]  ;;  %v613_v52 = vld [vmem:[%s822_s6] ss:$0 sm:$0xff] }
  0x20   :  { %161 = vmatpush.bf16.msra.mxu0 %v575_v6 }
  0x21   :  { %244 = vmatpush.bf16.msra.mxu1 %v583_v7  ;;  %410 = vmatpush.bf16.msra.mxu3 %v601_v33 }
  0x22   :  { %328 = vmatpush.bf16.msra.mxu2 %v592_v20 }
  0x24   :  { %162 = vmatpush.bf16.msra.mxu0 %v574_v8 }
  0x25   :  { %245 = vmatpush.bf16.msra.mxu1 %v582_v9  ;;  %411 = vmatpush.bf16.msra.mxu3 %v600_v34 }
  0x26   :  { %329 = vmatpush.bf16.msra.mxu2 %v591_v21 }
  0x28   :  { %163 = vmatpush.bf16.msra.mxu0 %v573_v10 }
  0x29   :  { %246 = vmatpush.bf16.msra.mxu1 %v581_v11  ;;  %412 = vmatpush.bf16.msra.mxu3 %v599_v35 }
  0x2a   :  { %330 = vmatpush.bf16.msra.mxu2 %v590_v22 }
  0x2c   :  { %164 = vmatpush.bf16.msra.mxu0 %v572_v12 }
  0x2d   :  { %247 = vmatpush.bf16.msra.mxu1 %v580_v16  ;;  %413 = vmatpush.bf16.msra.mxu3 %v598_v36 }
  0x2e   :  { %331 = vmatpush.bf16.msra.mxu2 %v589_v23 }
  0x30   :  { %165 = vmatpush.bf16.msra.mxu0 %v571_v13 }
  0x31   :  { %248 = vmatpush.bf16.msra.mxu1 %v579_v17  ;;  %414 = vmatpush.bf16.msra.mxu3 %v597_v37 }
  0x32   :  { %332 = vmatpush.bf16.msra.mxu2 %v588_v30 }
  0x33   :  { %166 = vmatmul.bf16.vlgmr.msra.gmra.mxu0 %v89_v15 }
  0x35   :  { %415 = vmatpush.bf16.msra.mxu3 %v596_v44 }
  0x36   :  { %333 = vmatpush.bf16.msra.mxu2 %v587_v31 }
  0x39   :  { %416 = vmatpush.bf16.msra.mxu3 %v595_v45 }
  0xb0   :  { %v167_v25 = vpop.f32.mrf.mxu0 }
  0xb1   :  { %v168_v26 = vadd.f32 %v610_v24, %v167_v25 }
  0xb3   :  { %v171_v27 = vmax.f32 %v168_v26, 0.0 }
  0xb5   :  { %v172_v28 = vpack.c.bf16 %v171_v27, %v171_v27 }
  0xb7   :  { %249 = vmatmul.bf16.vlgmr.msra.gmra.mxu1 %v172_v28 }
  0xb8   :  { %v169_v29 = vpop.f32.mrf.mxu0 }
 0x134   :  { %v250_v39 = vpop.f32.mrf.mxu1 }
 0x135   :  { %v251_v40 = vadd.f32 %v611_v38, %v250_v39 }
 0x137   :  { %v254_v41 = vmax.f32 %v251_v40, 0.0 }
 0x139   :  { %v255_v42 = vpack.c.bf16 %v254_v41, %v254_v41 }
 0x13b   :  { %334 = vmatmul.bf16.vlgmr.msra.gmra.mxu2 %v255_v42 }
 0x13c   :  { %v252_v43 = vpop.f32.mrf.mxu1 }
 0x1be   :  { %v335_v47 = vpop.f32.mrf.mxu2 }
 0x1bf   :  { %v336_v48 = vadd.f32 %v612_v46, %v335_v47 }
 0x1c1   :  { %v339_v49 = vmax.f32 %v336_v48, 0.0 }
 0x1c3   :  { %v340_v50 = vpack.c.bf16 %v339_v49, %v339_v49 }
 0x1c5   :  { %417 = vmatmul.bf16.vlgmr.msra.gmra.mxu3 %v340_v50 }
 0x1c6   :  { %v337_v51 = vpop.f32.mrf.mxu2 }
 0x248   :  { %v418_v53 = vpop.f32.mrf.mxu3 }
 0x249   :  { %v419_v54 = vadd.f32 %v613_v52, %v418_v53 }
 0x24b   :  { %422 = vst [vmem:[#allocation10] sm:$0xff] %v419_v54 }
 0x24c   :  { %433 = dma.vmem_to_hbm [thread:$0]  %s429_s27, 128, %s431_s30, [#allocation4]  }
 0x250   :  { %v420_v55 = vpop.f32.mrf.mxu3 }
 0x251   :  { %740 = dma.done.wait [#allocation4], 128  }
 0x252   :  { %741 = vsyncadd [#allocation4], 4294967168 }
 0x253   :  { %438 = vsyncpa [#allocation3], 1 }
 0x254   :  { %439 = vsyncpa [#allocation6], 1 }
 0x255   :  { %440 = vsyncpa [#allocation9], 1 }
 0x256   :  { %441 = vsyncpa [#allocation4], 1 }

</bundles_post_ra>
